<compile_context>
chip_gen: v6e
topology: v6e:2x2x1
jax: 0.10.0
libtpu: 0.0.40
codegen_flags: <defaults>
</compile_context>

<pallas_src>
import jax
import jax.numpy as jnp
from jax.experimental import pallas as pl
from jax.experimental.pallas import tpu as pltpu

_VMEM_BUDGET = 44 * 1024 * 1024  # fits v7x (64 MiB physical); well under v5e/v6e (128 MiB)


def pred_kernel(h_ref, w_ref, b_ref, out_ref):
    """One batch tile of the fused (value + policy) head.

    h_ref:   [TILE_B, H]       f32  (cast to bf16 in-kernel)
    w_ref:   [H, OUT_PAD]      bf16 (col 0 = value head, cols 1..A = policy)
    b_ref:   [1, OUT_PAD]      f32  (pad lanes pre-set to -1e30 on the host)
    out_ref: [TILE_B, OUT_PAD] bf16 (col 0 = v, cols 1..A = log-probs)
    """
    h = h_ref[...].astype(jnp.bfloat16)  # in-kernel cast, hidden under the DMA
    fused = jnp.dot(h, w_ref[...], preferred_element_type=jnp.float32) + b_ref[...]

    # Pad lanes were already pushed to -1e30 via the fused bias; only the value
    # lane (column 0) still needs to be excluded from the softmax reduction.
    is_value = jax.lax.broadcasted_iota(jnp.int32, fused.shape, 1) == 0
    logits = jnp.where(is_value, jnp.float32(-1e30), fused)

    # Numerically stable log-softmax in f32 (v5e has no bf16 VPU/EUP).
    m = jnp.max(logits, axis=-1, keepdims=True)
    shifted = logits - m
    lse = jnp.log(jnp.sum(jnp.exp(shifted), axis=-1, keepdims=True))
    logp = shifted - lse

    out_ref[...] = jnp.where(is_value, fused, logp).astype(out_ref.dtype)


def prepare_pred_params(wv, bv, wp, bp):
    """Fuse the two heads ONCE (not per forward call).

    wv: [H, 1], bv: [1, 1], wp: [H, A], bp: [1, A]  (f32)
    Returns (w_bf16 [H, OUT_PAD], b_f32 [1, OUT_PAD], A).
    """
    H, A = wp.shape
    out_w = 1 + A
    out_pad = max(128, pl.cdiv(out_w, 128) * 128)  # lane-dense output width
    w = jnp.zeros((H, out_pad), jnp.float32)
    w = w.at[:, 0:1].set(wv).at[:, 1:out_w].set(wp)
    # Pad-lane mask folded into the bias: exp(-1e30 - m) == 0 in the softmax.
    b = jnp.full((1, out_pad), -1e30, jnp.float32)
    b = b.at[:, 0:1].set(jnp.reshape(bv, (1, 1))).at[:, 1:out_w].set(jnp.reshape(bp, (1, A)))
    return w.astype(jnp.bfloat16), b, A


def _round_up(x, m):
    return pl.cdiv(x, m) * m


def _choose_tile_b(B, H, out_pad, *, max_tile_b=2048, vmem_budget=_VMEM_BUDGET):
    """Largest 16-aligned batch tile fitting ~75% of the VMEM budget, capped so
    the grid has >= 2 steps when B permits (v7x megacore)."""
    resident = H * out_pad * 2 + out_pad * 4      # single-buffered W (bf16) + bias (f32)
    per_row = (2 * H * 4                          # double-buffered f32 h tile
               + 2 * out_pad * 2                  # double-buffered bf16 out tile
               + 3 * out_pad * 4)                 # f32 intermediates headroom
    avail = max((3 * vmem_budget) // 4 - resident, 1 << 20)
    tile_b = min(max_tile_b, max(16, (avail // per_row) // 16 * 16))
    if B > 16:                                    # give both v7x TensorCores work
        tile_b = min(tile_b, max(16, _round_up(pl.cdiv(B, 2), 16)))
    return min(tile_b, max(16, _round_up(B, 16)))  # never larger than needed


def _build_in_specs(tile_b, H, out_pad, single_buffer_weights):
    h_spec = pl.BlockSpec((tile_b, H), lambda i: (i, 0))
    const = lambda i: (0, 0)
    if single_buffer_weights:
        w_spec = pl.BlockSpec((H, out_pad), const, pipeline_mode=pl.Buffered(1))
        b_spec = pl.BlockSpec((1, out_pad), const, pipeline_mode=pl.Buffered(1))
    else:
        w_spec = pl.BlockSpec((H, out_pad), const)
        b_spec = pl.BlockSpec((1, out_pad), const)
    return [h_spec, w_spec, b_spec]


def pred_forward(h, fused_params, *, max_tile_b=2048):
    """h: [B, H] f32; fused_params from prepare_pred_params.

    Returns (v [B, 1] f32, logp [B, A] f32), matching
    (nn.Linear(H, 1)(h), log_softmax(nn.Linear(H, A)(h), -1)).
    """
    w_bf, b_f32, n_act = fused_params
    B, H = h.shape
    out_pad = w_bf.shape[1]

    tile_b = _choose_tile_b(B, H, out_pad, max_tile_b=max_tile_b)
    grid = (pl.cdiv(B, tile_b),)  # non-divisible: Pallas masks the partial last block

    cost = pl.CostEstimate(
        flops=2 * B * H * out_pad,
        transcendentals=B * n_act,  # exp in the softmax
        bytes_accessed=B * H * 4 + w_bf.size * 2 + b_f32.size * 4 + B * out_pad * 2,
    )

    # TODO(synk): for very large `act` (OUT_PAD >> 128) tile the output dim with
    # an online logsumexp across N tiles instead of one wide slab.

    def run(single_buffer_weights):
        return pl.pallas_call(
            pred_kernel,
            out_shape=jax.ShapeDtypeStruct((B, out_pad), jnp.bfloat16),
            grid_spec=pltpu.PrefetchScalarGridSpec(
                num_scalar_prefetch=0,
                grid=grid,
                in_specs=_build_in_specs(tile_b, H, out_pad, single_buffer_weights),
                out_specs=pl.BlockSpec((tile_b, out_pad), lambda i: (i, 0)),
            ),
            compiler_params=pltpu.CompilerParams(
                dimension_semantics=("parallel",),   # megacore sharding of batch tiles
                vmem_limit_bytes=_VMEM_BUDGET,
            ),
            cost_estimate=cost,
        )(h, w_bf, b_f32)

    try:
        out = run(single_buffer_weights=True)
    except Exception:
        # pipeline_mode / pl.Buffered(1) not supported on this JAX/Mosaic build:
        # fall back to default (double-buffered) resident weight specs.
        out = run(single_buffer_weights=False)

    v = out[:, 0:1].astype(jnp.float32)
    logp = out[:, 1:1 + n_act].astype(jnp.float32)
    return v, logp


def init_params(key, hid, act):
    """Deterministic synthetic init (uniform +-1/sqrt(hid), like nn.Linear)."""
    k1, k2, k3, k4 = jax.random.split(key, 4)
    bound = 1.0 / jnp.sqrt(jnp.float32(hid))
    wv = jax.random.uniform(k1, (hid, 1), jnp.float32, -bound, bound)
    bv = jax.random.uniform(k2, (1, 1), jnp.float32, -bound, bound)
    wp = jax.random.uniform(k3, (hid, act), jnp.float32, -bound, bound)
    bp = jax.random.uniform(k4, (1, act), jnp.float32, -bound, bound)
    return wv, bv, wp, bp


if __name__ == "__main__":
    B, HID, ACT = 2, 32, 8
    key = jax.random.PRNGKey(0)
    kh, kp = jax.random.split(key)

    h = jax.random.normal(kh, (B, HID), jnp.float32)
    wv, bv, wp, bp = init_params(kp, HID, ACT)

    # Head fusion is done once, outside the per-call path.
    fused_params = prepare_pred_params(wv, bv, wp, bp)

    v, logp = jax.block_until_ready(pred_forward(h, fused_params))

    # Reference in plain f32 JAX (same math as the PyTorch module). The kernel
    # uses bf16 matmul operands and a bf16 output slab, so compare with a
    # bf16-appropriate tolerance.
    v_ref = h @ wv + bv
    logp_ref = jax.nn.log_softmax(h @ wp + bp, axis=-1)

    assert v.shape == (B, 1) and logp.shape == (B, ACT)
    assert jnp.allclose(v, v_ref, atol=5e-2), "value head mismatch"
    assert jnp.allclose(logp, logp_ref, atol=5e-2), "log_softmax mismatch"
    # logp must be a valid log-distribution despite lane padding (bf16 output).
    assert jnp.allclose(jnp.sum(jnp.exp(logp), axis=-1), 1.0, atol=2e-2), \
        "log-probs do not sum to 1"

    print("KERNEL_OK")
</pallas_src>

<mosaic_0001>
module attributes {stable_mosaic.version = 11 : i64} {
  func.func @pred_kernel(%arg0: i32, %arg1: memref<16x32xf32, #tpu.memory_space<vmem>>, %arg2: memref<32x128xbf16, #tpu.memory_space<vmem>>, %arg3: memref<1x128xf32, #tpu.memory_space<vmem>>, %arg4: memref<16x128xbf16, #tpu.memory_space<vmem>>) attributes {dimension_semantics = [#tpu.dimension_semantics<parallel>], iteration_bounds = array<i64: 1>, scalar_prefetch = 0 : i64, scratch_operands = 0 : i64, tpu.core_type = #tpu.core_type<tc>, window_params = [{transform_indices = @transform_0, window_bounds = array<i64: 16, 32>}, {pipeline_mode = #tpu.pipeline_mode<synchronous>, transform_indices = @transform_1, window_bounds = array<i64: 32, 128>}, {pipeline_mode = #tpu.pipeline_mode<synchronous>, transform_indices = @transform_2, window_bounds = array<i64: 1, 128>}, {transform_indices = @transform_3, window_bounds = array<i64: 16, 128>}]} {
    %c0 = arith.constant 0 : index
    %c0_0 = arith.constant 0 : index
    %0 = vector.load %arg1[%c0, %c0_0] : memref<16x32xf32, #tpu.memory_space<vmem>>, vector<16x32xf32>
    %1 = arith.truncf %0 : vector<16x32xf32> to vector<16x32xbf16>
    %c0_1 = arith.constant 0 : index
    %c0_2 = arith.constant 0 : index
    %2 = vector.load %arg2[%c0_1, %c0_2] : memref<32x128xbf16, #tpu.memory_space<vmem>>, vector<32x128xbf16>
    %cst = arith.constant dense<0.000000e+00> : vector<16x128xf32>
    %3 = tpu.matmul %1, %2, %cst {dimension_numbers = #tpu.dot_dimension_numbers<[1], [0], [0], [1], [0, 0, 1, 1], [], []>} : vector<16x32xbf16>, vector<32x128xbf16>, vector<16x128xf32> -> vector<16x128xf32>
    %c0_3 = arith.constant 0 : index
    %c0_4 = arith.constant 0 : index
    %4 = vector.load %arg3[%c0_3, %c0_4] : memref<1x128xf32, #tpu.memory_space<vmem>>, vector<1x128xf32>
    %5 = vector.broadcast %4 : vector<1x128xf32> to vector<16x128xf32>
    %6 = arith.addf %3, %5 : vector<16x128xf32>
    %7 = tpu.iota {dimensions = array<i32: 1>} : vector<16x128xi32>
    %c0_i32 = arith.constant 0 : i32
    %8 = vector.broadcast %c0_i32 : i32 to vector<16x128xi32>
    %9 = arith.cmpi eq, %7, %8 : vector<16x128xi32>
    %cst_5 = arith.constant -1.000000e+30 : f32
    %10 = vector.broadcast %cst_5 : f32 to vector<16x128xf32>
    %11 = arith.select %9, %10, %6 : vector<16x128xi1>, vector<16x128xf32>
    %cst_6 = arith.constant dense<0xFF800000> : vector<16xf32>
    %12 = vector.multi_reduction <maximumf>, %11, %cst_6 [1] : vector<16x128xf32> to vector<16xf32>
    %13 = vector.shape_cast %12 : vector<16xf32> to vector<16x1xf32>
    %14 = vector.broadcast %13 : vector<16x1xf32> to vector<16x128xf32>
    %15 = arith.subf %11, %14 : vector<16x128xf32>
    %16 = math.exp %15 : vector<16x128xf32>
    %cst_7 = arith.constant dense<0.000000e+00> : vector<16xf32>
    %17 = vector.multi_reduction <add>, %16, %cst_7 [1] : vector<16x128xf32> to vector<16xf32>
    %18 = vector.shape_cast %17 : vector<16xf32> to vector<16x1xf32>
    %19 = math.log %18 : vector<16x1xf32>
    %20 = vector.broadcast %19 : vector<16x1xf32> to vector<16x128xf32>
    %21 = arith.subf %15, %20 : vector<16x128xf32>
    %22 = arith.select %9, %6, %21 : vector<16x128xi1>, vector<16x128xf32>
    %23 = arith.truncf %22 : vector<16x128xf32> to vector<16x128xbf16>
    %c0_8 = arith.constant 0 : index
    %c0_9 = arith.constant 0 : index
    %24 = vector.load %arg4[%c0_8, %c0_9] : memref<16x128xbf16, #tpu.memory_space<vmem>>, vector<16x128xbf16>
    tpu.vector_store %arg4[%c0_8, %c0_9], %23 {strides = array<i32>} : memref<16x128xbf16, #tpu.memory_space<vmem>>, vector<16x128xbf16>,
    return
  }
  func.func @transform_0(%arg0: i32) -> (i32, i32) {
    %c0_i32 = arith.constant 0 : i32
    %c0_i32_0 = arith.constant 0 : i32
    return %arg0, %c0_i32 : i32, i32
  }
  func.func @transform_1(%arg0: i32) -> (i32, i32) {
    %c0_i32 = arith.constant 0 : i32
    %c0_i32_0 = arith.constant 0 : i32
    %c0_i32_1 = arith.constant 0 : i32
    return %c0_i32, %c0_i32_0 : i32, i32
  }
  func.func @transform_2(%arg0: i32) -> (i32, i32) {
    %c0_i32 = arith.constant 0 : i32
    %c0_i32_0 = arith.constant 0 : i32
    %c0_i32_1 = arith.constant 0 : i32
    return %c0_i32, %c0_i32_0 : i32, i32
  }
  func.func @transform_3(%arg0: i32) -> (i32, i32) {
    %c0_i32 = arith.constant 0 : i32
    %c0_i32_0 = arith.constant 0 : i32
    return %arg0, %c0_i32 : i32, i32
  }
}

module attributes {stable_mosaic.version = 11 : i64} {
  func.func @pred_kernel(%arg0: i32, %arg1: memref<16x32xf32, #tpu.memory_space<vmem>>, %arg2: memref<32x128xbf16, #tpu.memory_space<vmem>>, %arg3: memref<1x128xf32, #tpu.memory_space<vmem>>, %arg4: memref<16x128xbf16, #tpu.memory_space<vmem>>) attributes {dimension_semantics = [#tpu.dimension_semantics<parallel>], iteration_bounds = array<i64: 1>, scalar_prefetch = 0 : i64, scratch_operands = 0 : i64, tpu.core_type = #tpu.core_type<tc>, window_params = [{transform_indices = @transform_0, window_bounds = array<i64: 16, 32>}, {pipeline_mode = #tpu.pipeline_mode<synchronous>, transform_indices = @transform_1, window_bounds = array<i64: 32, 128>}, {pipeline_mode = #tpu.pipeline_mode<synchronous>, transform_indices = @transform_2, window_bounds = array<i64: 1, 128>}, {transform_indices = @transform_3, window_bounds = array<i64: 16, 128>}]} {
    %c0 = arith.constant 0 : index
    %c0_0 = arith.constant 0 : index
    %0 = vector.load %arg1[%c0, %c0_0] : memref<16x32xf32, #tpu.memory_space<vmem>>, vector<16x32xf32>
    %1 = arith.truncf %0 : vector<16x32xf32> to vector<16x32xbf16>
    %c0_1 = arith.constant 0 : index
    %c0_2 = arith.constant 0 : index
    %2 = vector.load %arg2[%c0_1, %c0_2] : memref<32x128xbf16, #tpu.memory_space<vmem>>, vector<32x128xbf16>
    %cst = arith.constant dense<0.000000e+00> : vector<16x128xf32>
    %3 = tpu.matmul %1, %2, %cst {dimension_numbers = #tpu.dot_dimension_numbers<[1], [0], [0], [1], [0, 0, 1, 1], [], []>} : vector<16x32xbf16>, vector<32x128xbf16>, vector<16x128xf32> -> vector<16x128xf32>
    %c0_3 = arith.constant 0 : index
    %c0_4 = arith.constant 0 : index
    %4 = vector.load %arg3[%c0_3, %c0_4] : memref<1x128xf32, #tpu.memory_space<vmem>>, vector<1x128xf32>
    %5 = vector.broadcast %4 : vector<1x128xf32> to vector<16x128xf32>
    %6 = arith.addf %3, %5 : vector<16x128xf32>
    %7 = tpu.iota {dimensions = array<i32: 1>} : vector<16x128xi32>
    %c0_i32 = arith.constant 0 : i32
    %8 = vector.broadcast %c0_i32 : i32 to vector<16x128xi32>
    %9 = arith.cmpi eq, %7, %8 : vector<16x128xi32>
    %cst_5 = arith.constant -1.000000e+30 : f32
    %10 = vector.broadcast %cst_5 : f32 to vector<16x128xf32>
    %11 = arith.select %9, %10, %6 : vector<16x128xi1>, vector<16x128xf32>
    %cst_6 = arith.constant dense<0xFF800000> : vector<16xf32>
    %12 = vector.multi_reduction <maximumf>, %11, %cst_6 [1] : vector<16x128xf32> to vector<16xf32>
    %13 = vector.shape_cast %12 : vector<16xf32> to vector<16x1xf32>
    %14 = vector.broadcast %13 : vector<16x1xf32> to vector<16x128xf32>
    %15 = arith.subf %11, %14 : vector<16x128xf32>
    %16 = math.exp %15 : vector<16x128xf32>
    %cst_7 = arith.constant dense<0.000000e+00> : vector<16xf32>
    %17 = vector.multi_reduction <add>, %16, %cst_7 [1] : vector<16x128xf32> to vector<16xf32>
    %18 = vector.shape_cast %17 : vector<16xf32> to vector<16x1xf32>
    %19 = math.log %18 : vector<16x1xf32>
    %20 = vector.broadcast %19 : vector<16x1xf32> to vector<16x128xf32>
    %21 = arith.subf %15, %20 : vector<16x128xf32>
    %22 = arith.select %9, %6, %21 : vector<16x128xi1>, vector<16x128xf32>
    %23 = arith.truncf %22 : vector<16x128xf32> to vector<16x128xbf16>
    %c0_8 = arith.constant 0 : index
    %c0_9 = arith.constant 0 : index
    %24 = vector.load %arg4[%c0_8, %c0_9] : memref<16x128xbf16, #tpu.memory_space<vmem>>, vector<16x128xbf16>
    tpu.vector_store %arg4[%c0_8, %c0_9], %23 {strides = array<i32>} : memref<16x128xbf16, #tpu.memory_space<vmem>>, vector<16x128xbf16>,
    return
  }
  func.func @transform_0(%arg0: i32) -> (i32, i32) {
    %c0_i32 = arith.constant 0 : i32
    %c0_i32_0 = arith.constant 0 : i32
    return %arg0, %c0_i32 : i32, i32
  }
  func.func @transform_1(%arg0: i32) -> (i32, i32) {
    %c0_i32 = arith.constant 0 : i32
    %c0_i32_0 = arith.constant 0 : i32
    %c0_i32_1 = arith.constant 0 : i32
    return %c0_i32, %c0_i32_0 : i32, i32
  }
  func.func @transform_2(%arg0: i32) -> (i32, i32) {
    %c0_i32 = arith.constant 0 : i32
    %c0_i32_0 = arith.constant 0 : i32
    %c0_i32_1 = arith.constant 0 : i32
    return %c0_i32, %c0_i32_0 : i32, i32
  }
  func.func @transform_3(%arg0: i32) -> (i32, i32) {
    %c0_i32 = arith.constant 0 : i32
    %c0_i32_0 = arith.constant 0 : i32
    return %arg0, %c0_i32 : i32, i32
  }
}

</mosaic_0001>

<bundles_post_ra>
// kernel: tpu_custom_call.1
= control target key start
LH: loop header
LB: loop body
LE: loop exit
PB: predicated region body
PF: predicated region fallthrough
CT: control target
= control target key end

     0   :  { %8 = vsyncpa [#allocation3], 0  ;;  %s383_s0 = inlined_call_operand.hbm [shape: f32[2,32], index: 0, kind: input, shape index: {}]   ;;  %s384_s1 = inlined_call_operand.hbm [shape: bf16[32,128], index: 1, kind: input, shape index: {}]   ;;  %s385_s2 = inlined_call_operand.vmem [shape: f32[1,128], index: 2, kind: input, shape index: {}]   ;;  %s386_s3 = inlined_call_operand.hbm [shape: bf16[2,128], index: 3, kind: output, shape index: {}]  }
   0x1   :  { %9 = vsyncpa [#allocation6], 0 }
   0x2   :  { %10 = vsyncpa [#allocation4], 0 }
   0x3   :  { %15 = vsyncadd [#allocation3], 224  ;;  %s335_s12 = smov [#allocation2]  }
   0x4   :  { %s16_s13 = sshll.u32 %s335_s12, 4  ;;  %s17_s13 = int_to_ptr.vmem [resolvable:$true] %s16_s13 }
   0x5   :  { %s277_s14 = scalar_lea.vmem %s17_s13, 32  ;;  %s281_s15 = scalar_lea.vmem %s17_s13, 256 }
   0x6   :  { %p278_p0 = scmp.ne.s32.totalorder %s17_s13, %s277_s14  ;;  %p282_p1 = scmp.lt.s32.totalorder %s17_s13, %s17_s13 }
   0x7   :  { %p283_p2 = scmp.lt.s32.totalorder %s281_s15, %s277_s14 }
   0x9   :  { %p284_p3 = por %p283_p2, %p282_p1 }
   0xb   :  { %p285_p4 = pnand %p284_p3, %p278_p0 }
   0xd   :  { %288 = shalt.err (!%p285_p4)
}
   0xe   :  { %s336_s16 = smov 32   ;;  %s337_s17 = smov 2  }
   0xf   :  { %22 = dma.hbm_to_vmem [thread:$0]  %s383_s0, 32, %s17_s13, [#allocation3], %s336_s16, %s336_s16, %s337_s17  }
  0x10   :  { %s338_s20 = smov [#allocation5]  }
  0x11   :  { %s28_s21 = sshll.u32 %s338_s20, 4  ;;  %s29_s21 = int_to_ptr.vmem [resolvable:$true] %s28_s21 }
  0x12   :  { %s297_s22 = scalar_lea.vmem %s29_s21, 256  ;;  %p302_p6 = scmp.lt.s32.totalorder %s29_s21, %s29_s21 }
  0x13   :  { %p298_p5 = scmp.ne.s32.totalorder %s29_s21, %s297_s22  ;;  %p303_p7 = scmp.lt.s32.totalorder %s297_s22, %s297_s22 }
  0x15   :  { %p304_p8 = por %p303_p7, %p302_p6 }
  0x17   :  { %p305_p9 = pnand %p304_p8, %p298_p5 }
  0x19   :  { %308 = shalt.err (!%p305_p9)
}
  0x1a   :  { %s339_s23 = smov 64   ;;  %s340_s24 = smov 4  }
  0x1b   :  { %34 = dma.hbm_to_vmem [thread:$0]  %s384_s1, 256, %s29_s21, [#allocation6], %s339_s23, %s339_s23, %s340_s24  }
  0x1c   :  { %329 = dma.done.wait [#allocation3], 256  }
  0x1d   :  { %330 = vsyncadd [#allocation3], 4294967040 }
  0x1e   :  { %331 = dma.done.wait [#allocation6], 256  }
  0x1f   :  { %332 = vsyncadd [#allocation6], 4294967040  ;;  %v341_v0 = vmov 0.0   ;;  %vm342_vm0 = vmmov 0   ;;  %v259_v1 = vld [vmem:[#allocation5 + $0x8] sm:$0xff]   ;;  %v260_v2 = vld [vmem:[#allocation5] sm:$0xff]   ;;  %v115_v6 = vlaneseq }
  0x20   :  { %239 = vmatprep.subr.bf16.mxu0 %v341_v0  ;;  %243 = vmatprep.mubr.msk.bf16.mxu0 %vm342_vm0, %v341_v0  ;;  %v44_v3 = vld [vmem:[#allocation2] sm:$0xff]  ;;  %v45_v4 = vld [vmem:[#allocation2 + $0x8] sm:$0xff]  ;;  %vm70_vm1 = vcmask 261120   ;;  %v343_v28 = vmov 1966171168  }
  0x21   :  { %240 = vmatpush3.bf16.msra.mxu0 %v259_v1  ;;  %v46_v5 = vpack.c.bf16 %v45_v4, %v44_v3  ;;  %v116_v7 = vand.u32 127, %v115_v6  ;;  %v227_v8 = vld [vmem:[%s385_s2] ss:$0 sm:$0xff]  ;;  %v146_v29 = vunpack.c.l.s4 %v343_v28  ;;  %v149_v33 = vshrl.u32 %v115_v6, 7 }
  0x22   :  { %241 = vmatprep.subr.bf16.mxu0 %v341_v0 }
  0x23   :  { %vm117_vm2 = vcmp.eq.s32.totalorder %v116_v7, 0  ;;  %v147_v32 = vunpack.c.0.s8 %v146_v29 }
  0x25   :  { %242 = vmatpush3.bf16.msra.mxu0 %v260_v2  ;;  %v150_v37 = vsub.s32 %v147_v32, %v149_v33 }
  0x28   :  { %244 = vmatmul.mubr.msk.bf16.vlgmr.msra.gmra.mxu0 %vm70_vm1, %v46_v5 }
  0xe8   :  { %v108_v9 = vpop.f32.mrf.mxu0 }
  0xe9   :  { %v109_v10 = vadd.f32 %v227_v8, %v108_v9 }
  0xea   :  { %v245_v11 = vpop.f32.mrf.mxu0 }
  0xeb   :  { %v118_v12 = vsel %vm117_vm2, -1e+30, %v109_v10 }
  0xec   :  { %120 = vmax.xlane.f32.xlu0 %v118_v12  ;;  %v111_v13 = vpop.f32.mrf.mxu0 }
  0xed   :  { %v112_v14 = vadd.f32 %v227_v8, %v111_v13 }
  0xee   :  { %v246_v15 = vpop.f32.mrf.mxu0 }
  0xef   :  { %v119_v16 = vsel %vm117_vm2, -1e+30, %v112_v14 }
  0xf0   :  { %122 = vmax.xlane.f32.xlu0 %v119_v16 }
 0x175   :  { %v121_v17 = vpop.xlane.xlu0 %120 }
 0x176   :  { %v124_v18 = vsub.f32 %v118_v12, %v121_v17 }
 0x178   :  { %v126_v19 = vmul.f32 1.442695, %v124_v18 }
 0x179   :  { %v123_v20 = vpop.xlane.xlu0 %122 }
 0x17a   :  { %v125_v21 = vsub.f32 %v119_v16, %v123_v20  ;;  %261 = vpow2.f32 %v126_v19 }
 0x17c   :  { %v128_v22 = vmul.f32 1.442695, %v125_v21 }
 0x17e   :  { %263 = vpow2.f32 %v128_v22 }
 0x187   :  { %v262_v23 = vpop.eup %261 }
 0x188   :  { %130 = vadd.xlane.f32.xlu1 %v262_v23 }
 0x18b   :  { %v264_v24 = vpop.eup %263 }
 0x18c   :  { %132 = vadd.xlane.f32.xlu1 %v264_v24 }
 0x211   :  { %v131_v25 = vpop.xlane.xlu1 %130 }
 0x212   :  { %265 = vlog2.f32 %v131_v25 }
 0x215   :  { %v133_v26 = vpop.xlane.xlu1 %132 }
 0x216   :  { %267 = vlog2.f32 %v133_v26 }
 0x21f   :  { %v266_v27 = vpop.eup %265 }
 0x220   :  { %v135_v30 = vmul.f32 0.6931472, %v266_v27 }
 0x222   :  { %v138_v34 = vsub.f32 %v124_v18, %v135_v30 }
 0x223   :  { %v268_v31 = vpop.eup %267 }
 0x224   :  { %v137_v35 = vmul.f32 0.6931472, %v268_v31  ;;  %v140_v38 = vsel %vm117_vm2, %v109_v10, %v138_v34 }
 0x226   :  { %v139_v36 = vsub.f32 %v125_v21, %v137_v35 }
 0x228   :  { %v141_v39 = vsel %vm117_vm2, %v112_v14, %v139_v36 }
 0x229   :  { %v142_v40 = vpack.c.bf16 %v141_v39, %v140_v38  ;;  %v231_v41 = vpack.c.bf16 %v141_v39, %v141_v39 }
 0x22b   :  { %v151_v42 = vrot.slane %v142_v40, %v150_v37  ;;  %v158_v43 = vrot.slane %v231_v41, %v150_v37 }
 0x22d   :  { %v159_v44 = vcombine.high %v151_v42, %v151_v42  ;;  %v160_v45 = vcombine.high %v158_v43, %v158_v43  ;;  %v167_v46 = vrot.slane %v151_v42, %v150_v37  ;;  %v174_v47 = vrot.slane %v158_v43, %v150_v37  ;;  %232 = vst.sshfl [vmem:[#allocation7] sm:$0x1 pattern:$0x73625140] %v151_v42 }
 0x22e   :  { %234 = vst.sshfl [vmem:[#allocation7 + $0x4] sm:$0x1 pattern:$0x73625140] %v158_v43 }
 0x22f   :  { %v181_v48 = vrot.slane %v159_v44, %v150_v37  ;;  %v188_v49 = vrot.slane %v160_v45, %v150_v37  ;;  %v189_v50 = vcombine.high %v167_v46, %v167_v46  ;;  %v190_v51 = vcombine.high %v174_v47, %v174_v47  ;;  %233 = vst.sshfl [vmem:[#allocation7 + $0x1] sm:$0x1 pattern:$0x73625140] %v159_v44 }
 0x230   :  { %235 = vst.sshfl [vmem:[#allocation7 + $0x5] sm:$0x1 pattern:$0x73625140] %v160_v45 }
 0x231   :  { %v191_v52 = vcombine.high %v181_v48, %v181_v48  ;;  %v192_v53 = vcombine.high %v188_v49, %v188_v49  ;;  %203 = vst [vmem:[#allocation7 + $0x2] sm:$0x1] %v189_v50  ;;  %207 = vst [vmem:[#allocation7 + $0x6] sm:$0x1] %v190_v51 }
 0x233   :  { %204 = vst [vmem:[#allocation7 + $0x3] sm:$0x1] %v191_v52  ;;  %208 = vst [vmem:[#allocation7 + $0x7] sm:$0x1] %v192_v53 }
 0x234   :  { %213 = vsyncadd [#allocation4], 112  ;;  %s344_s2 = smov [#allocation7]  }
 0x235   :  { %s214_s27 = sshll.u32 %s344_s2, 4  ;;  %s215_s27 = int_to_ptr.vmem [resolvable:$true] %s214_s27 }
 0x236   :  { %s309_s28 = scalar_lea.vmem %s215_s27, 16  ;;  %s313_s29 = scalar_lea.vmem %s215_s27, 128 }
 0x237   :  { %p310_p10 = scmp.ne.s32.totalorder %s215_s27, %s309_s28  ;;  %p314_p11 = scmp.lt.s32.totalorder %s215_s27, %s215_s27 }
 0x238   :  { %p315_p12 = scmp.lt.s32.totalorder %s313_s29, %s309_s28 }
 0x23a   :  { %p316_p13 = por %p315_p12, %p314_p11 }
 0x23c   :  { %p317_p0 = pnand %p316_p13, %p310_p10 }
 0x23e   :  { %320 = shalt.err (!%p317_p0)
}
 0x23f   :  { %s345_s30 = smov 16   ;;  %s346_s4 = smov 1  }
 0x240   :  { %220 = dma.vmem_to_hbm [thread:$0]  %s215_s27, 16, %s386_s3, [#allocation4], %s345_s30, %s345_s30, %s346_s4  }
 0x241   :  { %333 = dma.done.wait [#allocation4], 128  }
 0x242   :  { %334 = vsyncadd [#allocation4], 4294967168 }
 0x243   :  { %224 = vsyncpa [#allocation3], 1 }
 0x244   :  { %225 = vsyncpa [#allocation6], 1 }
 0x245   :  { %226 = vsyncpa [#allocation4], 1 }

// kernel: tpu_custom_call.1
= control target key start
LH: loop header
LB: loop body
LE: loop exit
PB: predicated region body
PF: predicated region fallthrough
CT: control target
= control target key end

     0   :  { %8 = vsyncpa [#allocation3], 0  ;;  %s383_s0 = inlined_call_operand.hbm [shape: f32[2,32], index: 0, kind: input, shape index: {}]   ;;  %s384_s1 = inlined_call_operand.hbm [shape: bf16[32,128], index: 1, kind: input, shape index: {}]   ;;  %s385_s2 = inlined_call_operand.vmem [shape: f32[1,128], index: 2, kind: input, shape index: {}]   ;;  %s386_s3 = inlined_call_operand.hbm [shape: bf16[2,128], index: 3, kind: output, shape index: {}]  }
   0x1   :  { %9 = vsyncpa [#allocation6], 0 }
   0x2   :  { %10 = vsyncpa [#allocation4], 0 }
   0x3   :  { %15 = vsyncadd [#allocation3], 224  ;;  %s335_s12 = smov [#allocation2]  }
   0x4   :  { %s16_s13 = sshll.u32 %s335_s12, 4  ;;  %s17_s13 = int_to_ptr.vmem [resolvable:$true] %s16_s13 }
   0x5   :  { %s277_s14 = scalar_lea.vmem %s17_s13, 32  ;;  %s281_s15 = scalar_lea.vmem %s17_s13, 256 }
   0x6   :  { %p278_p0 = scmp.ne.s32.totalorder %s17_s13, %s277_s14  ;;  %p282_p1 = scmp.lt.s32.totalorder %s17_s13, %s17_s13 }
   0x7   :  { %p283_p2 = scmp.lt.s32.totalorder %s281_s15, %s277_s14 }
   0x9   :  { %p284_p3 = por %p283_p2, %p282_p1 }
   0xb   :  { %p285_p4 = pnand %p284_p3, %p278_p0 }
   0xd   :  { %288 = shalt.err (!%p285_p4)
}
   0xe   :  { %s336_s16 = smov 32   ;;  %s337_s17 = smov 2  }
   0xf   :  { %22 = dma.hbm_to_vmem [thread:$0]  %s383_s0, 32, %s17_s13, [#allocation3], %s336_s16, %s336_s16, %s337_s17  }
  0x10   :  { %s338_s20 = smov [#allocation5]  }
  0x11   :  { %s28_s21 = sshll.u32 %s338_s20, 4  ;;  %s29_s21 = int_to_ptr.vmem [resolvable:$true] %s28_s21 }
  0x12   :  { %s297_s22 = scalar_lea.vmem %s29_s21, 256  ;;  %p302_p6 = scmp.lt.s32.totalorder %s29_s21, %s29_s21 }
  0x13   :  { %p298_p5 = scmp.ne.s32.totalorder %s29_s21, %s297_s22  ;;  %p303_p7 = scmp.lt.s32.totalorder %s297_s22, %s297_s22 }
  0x15   :  { %p304_p8 = por %p303_p7, %p302_p6 }
  0x17   :  { %p305_p9 = pnand %p304_p8, %p298_p5 }
  0x19   :  { %308 = shalt.err (!%p305_p9)
}
  0x1a   :  { %s339_s23 = smov 64   ;;  %s340_s24 = smov 4  }
  0x1b   :  { %34 = dma.hbm_to_vmem [thread:$0]  %s384_s1, 256, %s29_s21, [#allocation6], %s339_s23, %s339_s23, %s340_s24  }
  0x1c   :  { %329 = dma.done.wait [#allocation3], 256  }
  0x1d   :  { %330 = vsyncadd [#allocation3], 4294967040 }
  0x1e   :  { %331 = dma.done.wait [#allocation6], 256  }
  0x1f   :  { %332 = vsyncadd [#allocation6], 4294967040  ;;  %v341_v0 = vmov 0.0   ;;  %vm342_vm0 = vmmov 0   ;;  %v259_v1 = vld [vmem:[#allocation5 + $0x8] sm:$0xff]   ;;  %v260_v2 = vld [vmem:[#allocation5] sm:$0xff]   ;;  %v115_v6 = vlaneseq }
  0x20   :  { %239 = vmatprep.subr.bf16.mxu0 %v341_v0  ;;  %243 = vmatprep.mubr.msk.bf16.mxu0 %vm342_vm0, %v341_v0  ;;  %v44_v3 = vld [vmem:[#allocation2] sm:$0xff]  ;;  %v45_v4 = vld [vmem:[#allocation2 + $0x8] sm:$0xff]  ;;  %vm70_vm1 = vcmask 261120   ;;  %v343_v28 = vmov 1966171168  }
  0x21   :  { %240 = vmatpush3.bf16.msra.mxu0 %v259_v1  ;;  %v46_v5 = vpack.c.bf16 %v45_v4, %v44_v3  ;;  %v116_v7 = vand.u32 127, %v115_v6  ;;  %v227_v8 = vld [vmem:[%s385_s2] ss:$0 sm:$0xff]  ;;  %v146_v29 = vunpack.c.l.s4 %v343_v28  ;;  %v149_v33 = vshrl.u32 %v115_v6, 7 }
  0x22   :  { %241 = vmatprep.subr.bf16.mxu0 %v341_v0 }
  0x23   :  { %vm117_vm2 = vcmp.eq.s32.totalorder %v116_v7, 0  ;;  %v147_v32 = vunpack.c.0.s8 %v146_v29 }
  0x25   :  { %242 = vmatpush3.bf16.msra.mxu0 %v260_v2  ;;  %v150_v37 = vsub.s32 %v147_v32, %v149_v33 }
  0x28   :  { %244 = vmatmul.mubr.msk.bf16.vlgmr.msra.gmra.mxu0 %vm70_vm1, %v46_v5 }
  0xe8   :  { %v108_v9 = vpop.f32.mrf.mxu0 }
  0xe9   :  { %v109_v10 = vadd.f32 %v227_v8, %v108_v9 }
  0xea   :  { %v245_v11 = vpop.f32.mrf.mxu0 }
  0xeb   :  { %v118_v12 = vsel %vm117_vm2, -1e+30, %v109_v10 }
  0xec   :  { %120 = vmax.xlane.f32.xlu0 %v118_v12  ;;  %v111_v13 = vpop.f32.mrf.mxu0 }
  0xed   :  { %v112_v14 = vadd.f32 %v227_v8, %v111_v13 }
  0xee   :  { %v246_v15 = vpop.f32.mrf.mxu0 }
  0xef   :  { %v119_v16 = vsel %vm117_vm2, -1e+30, %v112_v14 }
  0xf0   :  { %122 = vmax.xlane.f32.xlu0 %v119_v16 }
 0x175   :  { %v121_v17 = vpop.xlane.xlu0 %120 }
 0x176   :  { %v124_v18 = vsub.f32 %v118_v12, %v121_v17 }
 0x178   :  { %v126_v19 = vmul.f32 1.442695, %v124_v18 }
 0x179   :  { %v123_v20 = vpop.xlane.xlu0 %122 }
 0x17a   :  { %v125_v21 = vsub.f32 %v119_v16, %v123_v20  ;;  %261 = vpow2.f32 %v126_v19 }
 0x17c   :  { %v128_v22 = vmul.f32 1.442695, %v125_v21 }
 0x17e   :  { %263 = vpow2.f32 %v128_v22 }
 0x187   :  { %v262_v23 = vpop.eup %261 }
 0x188   :  { %130 = vadd.xlane.f32.xlu1 %v262_v23 }
 0x18b   :  { %v264_v24 = vpop.eup %263 }
 0x18c   :  { %132 = vadd.xlane.f32.xlu1 %v264_v24 }
 0x211   :  { %v131_v25 = vpop.xlane.xlu1 %130 }
 0x212   :  { %265 = vlog2.f32 %v131_v25 }
 0x215   :  { %v133_v26 = vpop.xlane.xlu1 %132 }
 0x216   :  { %267 = vlog2.f32 %v133_v26 }
 0x21f   :  { %v266_v27 = vpop.eup %265 }
 0x220   :  { %v135_v30 = vmul.f32 0.6931472, %v266_v27 }
 0x222   :  { %v138_v34 = vsub.f32 %v124_v18, %v135_v30 }
 0x223   :  { %v268_v31 = vpop.eup %267 }
 0x224   :  { %v137_v35 = vmul.f32 0.6931472, %v268_v31  ;;  %v140_v38 = vsel %vm117_vm2, %v109_v10, %v138_v34 }
 0x226   :  { %v139_v36 = vsub.f32 %v125_v21, %v137_v35 }
 0x228   :  { %v141_v39 = vsel %vm117_vm2, %v112_v14, %v139_v36 }
 0x229   :  { %v142_v40 = vpack.c.bf16 %v141_v39, %v140_v38  ;;  %v231_v41 = vpack.c.bf16 %v141_v39, %v141_v39 }
 0x22b   :  { %v151_v42 = vrot.slane %v142_v40, %v150_v37  ;;  %v158_v43 = vrot.slane %v231_v41, %v150_v37 }
 0x22d   :  { %v159_v44 = vcombine.high %v151_v42, %v151_v42  ;;  %v160_v45 = vcombine.high %v158_v43, %v158_v43  ;;  %v167_v46 = vrot.slane %v151_v42, %v150_v37  ;;  %v174_v47 = vrot.slane %v158_v43, %v150_v37  ;;  %232 = vst.sshfl [vmem:[#allocation7] sm:$0x1 pattern:$0x73625140] %v151_v42 }
 0x22e   :  { %234 = vst.sshfl [vmem:[#allocation7 + $0x4] sm:$0x1 pattern:$0x73625140] %v158_v43 }
 0x22f   :  { %v181_v48 = vrot.slane %v159_v44, %v150_v37  ;;  %v188_v49 = vrot.slane %v160_v45, %v150_v37  ;;  %v189_v50 = vcombine.high %v167_v46, %v167_v46  ;;  %v190_v51 = vcombine.high %v174_v47, %v174_v47  ;;  %233 = vst.sshfl [vmem:[#allocation7 + $0x1] sm:$0x1 pattern:$0x73625140] %v159_v44 }
 0x230   :  { %235 = vst.sshfl [vmem:[#allocation7 + $0x5] sm:$0x1 pattern:$0x73625140] %v160_v45 }
 0x231   :  { %v191_v52 = vcombine.high %v181_v48, %v181_v48  ;;  %v192_v53 = vcombine.high %v188_v49, %v188_v49  ;;  %203 = vst [vmem:[#allocation7 + $0x2] sm:$0x1] %v189_v50  ;;  %207 = vst [vmem:[#allocation7 + $0x6] sm:$0x1] %v190_v51 }
 0x233   :  { %204 = vst [vmem:[#allocation7 + $0x3] sm:$0x1] %v191_v52  ;;  %208 = vst [vmem:[#allocation7 + $0x7] sm:$0x1] %v192_v53 }
 0x234   :  { %213 = vsyncadd [#allocation4], 112  ;;  %s344_s2 = smov [#allocation7]  }
 0x235   :  { %s214_s27 = sshll.u32 %s344_s2, 4  ;;  %s215_s27 = int_to_ptr.vmem [resolvable:$true] %s214_s27 }
 0x236   :  { %s309_s28 = scalar_lea.vmem %s215_s27, 16  ;;  %s313_s29 = scalar_lea.vmem %s215_s27, 128 }
 0x237   :  { %p310_p10 = scmp.ne.s32.totalorder %s215_s27, %s309_s28  ;;  %p314_p11 = scmp.lt.s32.totalorder %s215_s27, %s215_s27 }
 0x238   :  { %p315_p12 = scmp.lt.s32.totalorder %s313_s29, %s309_s28 }
 0x23a   :  { %p316_p13 = por %p315_p12, %p314_p11 }
 0x23c   :  { %p317_p0 = pnand %p316_p13, %p310_p10 }
 0x23e   :  { %320 = shalt.err (!%p317_p0)
}
 0x23f   :  { %s345_s30 = smov 16   ;;  %s346_s4 = smov 1  }
 0x240   :  { %220 = dma.vmem_to_hbm [thread:$0]  %s215_s27, 16, %s386_s3, [#allocation4], %s345_s30, %s345_s30, %s346_s4  }
 0x241   :  { %333 = dma.done.wait [#allocation4], 128  }
 0x242   :  { %334 = vsyncadd [#allocation4], 4294967168 }
 0x243   :  { %224 = vsyncpa [#allocation3], 1 }
 0x244   :  { %225 = vsyncpa [#allocation6], 1 }
 0x245   :  { %226 = vsyncpa [#allocation4], 1 }

</bundles_post_ra>
